<compile_context>
chip_gen: v7x
topology: tpu7x:2x2x1
jax: 0.10.0
libtpu: 0.0.40
codegen_flags: <defaults>
</compile_context>

<pallas_src>
import functools
import math

import jax
import jax.numpy as jnp
from jax import lax
from jax.experimental import pallas as pl
from jax.experimental.pallas import tpu as pltpu


_INV_SQRT2 = 1.0 / math.sqrt(2.0)


def _round_up(n, m):
    return ((n + m - 1) // m) * m


def _gelu_f32(x, approximate):
    if approximate:
        # tanh approximation runs on the EUP slot (v5e VALU relief); slight
        # numeric delta vs PyTorch's exact gelu -- opt-in only.
        return jax.nn.gelu(x, approximate=True)
    return 0.5 * x * (1.0 + lax.erf(x * _INV_SQRT2))


def _ff_kernel(x_ref, w1a_ref, w1g_ref, b1a_ref, b1g_ref, w2_ref, b2_ref,
               o_ref, acc_ref, *, approximate_gelu):
    # x_ref:   (TM, dim_p)
    # w1a_ref: (dim_p, TH)  "value" half of W1      w1g_ref: (dim_p, TH) "gate"
    # b1a_ref: (1, TH)                               b1g_ref: (1, TH)
    # w2_ref:  (TH, dim_p)                           b2_ref:  (1, dim_p)
    # o_ref:   (TM, dim_p)                           acc_ref: (TM, dim_p) f32
    h = pl.program_id(1)

    @pl.when(h == 0)
    def _():
        acc_ref[...] = jnp.zeros_like(acc_ref)

    x = x_ref[...]

    # Gate half first, GELU applied immediately -> fewer live f32 intermediates.
    g = jnp.dot(x, w1g_ref[...], preferred_element_type=jnp.float32)
    g = _gelu_f32(g + b1g_ref[...].astype(jnp.float32), approximate_gelu)

    a = jnp.dot(x, w1a_ref[...], preferred_element_type=jnp.float32)
    a = a + b1a_ref[...].astype(jnp.float32)

    u = a * g  # GEGLU; Dropout(p=0.0) is identity.

    acc_ref[...] += jnp.dot(u.astype(w2_ref.dtype), w2_ref[...],
                            preferred_element_type=jnp.float32)

    @pl.when(h == pl.num_programs(1) - 1)
    def _():
        o_ref[...] = (acc_ref[...]
                      + b2_ref[...].astype(jnp.float32)).astype(o_ref.dtype)


def _vmem_budget_bytes():
    """Per-TensorCore VMEM budget (bytes) with headroom for Mosaic scratch."""
    phys = 64 << 20  # conservative fallback: v7x per-TC VMEM
    try:
        cap = getattr(pltpu.get_tpu_info(), "vmem_capacity_bytes", None)
        if cap:
            phys = int(cap)
    except Exception:
        pass
    # Leave 8 MiB for compiler/internal scratch; never request more than
    # ~100 MiB even on 128 MiB parts (v5e/v6e), budget per TC not per chip.
    return max(32 << 20, min(phys - (8 << 20), 100 << 20))


def feedforward(x, w1, b1, w2, b2, *, tile_m=256, lane_multiple=128,
                hidden_tile=None, mxu_dtype=None, approximate_gelu=False):
    """x: (batch, seq, dim); w1: (dim, 2*hidden); b1: (2*hidden,);
    w2: (hidden, dim); b2: (dim,)."""
    B, S, dim = x.shape
    hidden = w2.shape[0]
    assert w1.shape == (dim, 2 * hidden)
    assert b1.shape == (2 * hidden,)
    assert b2.shape == (dim,)
    M = B * S

    out_dtype = x.dtype
    compute_dtype = jnp.dtype(mxu_dtype) if mxu_dtype is not None else jnp.dtype(x.dtype)
    c_item = compute_dtype.itemsize

    lane = int(lane_multiple)
    dim_p = _round_up(dim, lane)
    hidden_p0 = _round_up(hidden, lane)

    TM = max(8, min(tile_m, _round_up(M, 8)))
    budget = _vmem_budget_bytes()

    def est(tm, th, single_block):
        wbuf = 1 if single_block else 2          # Buffered(1) vs streamed
        weights = wbuf * c_item * (2 * dim_p * th + th * dim_p)   # w1a, w1g, w2
        biases = wbuf * 4 * 2 * th + 4 * dim_p                    # b1a/b1g, b2
        xo = 4 * tm * dim_p * c_item             # x + out, double-buffered
        acc = tm * dim_p * 4                     # f32 accumulator scratch
        inter = 3 * tm * th * 4                  # f32 GEGLU intermediates + slack
        return weights + biases + xo + acc + inter

    # Choose the hidden tile: resident if it fits, otherwise stream it.
    if hidden_tile is not None:
        TH = min(_round_up(hidden_tile, lane), hidden_p0)
    else:
        TH = hidden_p0
        while TH > lane and est(TM, TH, TH == hidden_p0) > budget:
            TH = max(lane, _round_up(TH // 2, lane))
    while TM > 8 and est(TM, TH, TH == hidden_p0) > budget:
        TM = max(8, _round_up(TM // 2, 8))

    hidden_p = _round_up(hidden_p0, TH)
    n_h = hidden_p // TH
    M_p = _round_up(M, TM)
    n_m = M_p // TM

    def pad2(a, r, c):
        return jnp.pad(a, ((0, r - a.shape[0]), (0, c - a.shape[1])))

    # Split W1/b1 into GEGLU halves at the *logical* hidden, then pad each half
    # independently so zero-padding is inert (padded columns give u == 0).
    w1a_p = pad2(w1[:, :hidden], dim_p, hidden_p).astype(compute_dtype)
    w1g_p = pad2(w1[:, hidden:], dim_p, hidden_p).astype(compute_dtype)
    b1a_p = jnp.pad(b1[:hidden], (0, hidden_p - hidden)).reshape(1, hidden_p)
    b1g_p = jnp.pad(b1[hidden:], (0, hidden_p - hidden)).reshape(1, hidden_p)
    w2_p = pad2(w2, hidden_p, dim_p).astype(compute_dtype)
    b2_p = jnp.pad(b2, (0, dim_p - dim)).reshape(1, dim_p)

    x2d = jnp.pad(x.reshape(M, dim).astype(compute_dtype),
                  ((0, M_p - M), (0, dim_p - dim)))

    wbytes = sum(int(a.size) * jnp.dtype(a.dtype).itemsize
                 for a in (w1a_p, w1g_p, b1a_p, b1g_p, w2_p, b2_p))
    flops = 2 * M_p * dim_p * (2 * hidden_p) + 2 * M_p * hidden_p * dim_p
    cost = pl.CostEstimate(
        flops=flops,
        transcendentals=M_p * hidden_p,
        bytes_accessed=int(x2d.size) * c_item + wbytes
                       + M_p * dim_p * jnp.dtype(out_dtype).itemsize,
    )

    need = est(TM, TH, n_h == 1)
    vmem_limit = int(min(max(int(1.25 * need), 32 << 20), budget))

    kernel = functools.partial(_ff_kernel, approximate_gelu=approximate_gelu)

    def build(use_buffered):
        def spec(shape, index_map, constant):
            if use_buffered and constant:
                # Constant block index -> single buffer (halves weight residency).
                return pl.BlockSpec(shape, index_map, pipeline_mode=pl.Buffered(1))
            return pl.BlockSpec(shape, index_map)

        const_w = (n_h == 1)  # weight blocks only constant when hidden is resident
        in_specs = [
            spec((TM, dim_p), lambda i, h: (i, 0), False),   # x tile
            spec((dim_p, TH), lambda i, h: (0, h), const_w),  # w1a
            spec((dim_p, TH), lambda i, h: (0, h), const_w),  # w1g
            spec((1, TH), lambda i, h: (0, h), const_w),      # b1a
            spec((1, TH), lambda i, h: (0, h), const_w),      # b1g
            spec((TH, dim_p), lambda i, h: (h, 0), const_w),  # w2
            spec((1, dim_p), lambda i, h: (0, 0), True),      # b2 (always constant)
        ]
        out_spec = pl.BlockSpec((TM, dim_p), lambda i, h: (i, 0))

        return pl.pallas_call(
            kernel,
            out_shape=jax.ShapeDtypeStruct((M_p, dim_p), out_dtype),
            grid_spec=pltpu.PrefetchScalarGridSpec(
                num_scalar_prefetch=0,
                grid=(n_m, n_h),
                in_specs=in_specs,
                out_specs=out_spec,
                scratch_shapes=[pltpu.VMEM((TM, dim_p), jnp.float32)],
            ),
            compiler_params=pltpu.CompilerParams(
                dimension_semantics=("parallel", "arbitrary"),
                vmem_limit_bytes=vmem_limit,
            ),
            cost_estimate=cost,
        )

    args = (x2d, w1a_p, w1g_p, b1a_p, b1g_p, w2_p, b2_p)
    try:
        out = build(True)(*args)
    except Exception:
        # Fallback if this JAX build rejects pipeline_mode=pl.Buffered(1) on
        # pallas_call BlockSpecs; default double-buffering is still correct.
        out = build(False)(*args)

    return out[:M, :dim].reshape(B, S, dim)


def feedforward_reference(x, w1, b1, w2, b2):
    h = jnp.einsum("bsd,df->bsf", x, w1) + b1
    hidden = w2.shape[0]
    a, g = h[..., :hidden], h[..., hidden:]
    u = a * (0.5 * g * (1.0 + lax.erf(g * _INV_SQRT2)))
    return jnp.einsum("bsh,hd->bsd", u, w2) + b2


if __name__ == "__main__":
    batch, seq, dim, mult = 2, 8, 32, 4
    hidden = dim * mult  # 128

    key = jax.random.PRNGKey(0)
    k_x, k_w1, k_b1, k_w2, k_b2 = jax.random.split(key, 5)

    x = jax.random.normal(k_x, (batch, seq, dim), dtype=jnp.float32)

    # nn.Linear-style uniform(-1/sqrt(fan_in), 1/sqrt(fan_in)) init.
    bound1 = 1.0 / math.sqrt(dim)
    w1 = jax.random.uniform(k_w1, (dim, 2 * hidden), jnp.float32, -bound1, bound1)
    b1 = jax.random.uniform(k_b1, (2 * hidden,), jnp.float32, -bound1, bound1)
    bound2 = 1.0 / math.sqrt(hidden)
    w2 = jax.random.uniform(k_w2, (hidden, dim), jnp.float32, -bound2, bound2)
    b2 = jax.random.uniform(k_b2, (dim,), jnp.float32, -bound2, bound2)

    out = jax.block_until_ready(feedforward(x, w1, b1, w2, b2))
    ref = feedforward_reference(x, w1, b1, w2, b2)
    assert out.shape == (batch, seq, dim)
    assert jnp.allclose(out, ref, atol=1e-4, rtol=1e-4)

    # Also exercise the hidden-streamed (accumulator) path used when weights
    # exceed the per-TC VMEM budget, by forcing a small hidden tile.
    hidden2 = 256
    w1b = jax.random.uniform(k_w1, (dim, 2 * hidden2), jnp.float32, -0.1, 0.1)
    b1b = jax.random.uniform(k_b1, (2 * hidden2,), jnp.float32, -0.1, 0.1)
    w2b = jax.random.uniform(k_w2, (hidden2, dim), jnp.float32, -0.1, 0.1)
    b2b = jax.random.uniform(k_b2, (dim,), jnp.float32, -0.1, 0.1)
    out2 = jax.block_until_ready(
        feedforward(x, w1b, b1b, w2b, b2b, hidden_tile=128))
    ref2 = feedforward_reference(x, w1b, b1b, w2b, b2b)
    assert jnp.allclose(out2, ref2, atol=1e-4, rtol=1e-4)

    print("KERNEL_OK")
</pallas_src>

<mosaic_0001>
module attributes {stable_mosaic.version = 11 : i64} {
  func.func @_ff_kernel(%arg0: i32, %arg1: i32, %arg2: memref<16x128xf32, #tpu.memory_space<vmem>>, %arg3: memref<128x128xf32, #tpu.memory_space<vmem>>, %arg4: memref<128x128xf32, #tpu.memory_space<vmem>>, %arg5: memref<1x128xf32, #tpu.memory_space<vmem>>, %arg6: memref<1x128xf32, #tpu.memory_space<vmem>>, %arg7: memref<128x128xf32, #tpu.memory_space<vmem>>, %arg8: memref<1x128xf32, #tpu.memory_space<vmem>>, %arg9: memref<16x128xf32, #tpu.memory_space<vmem>>, %arg10: memref<16x128xf32, #tpu.memory_space<vmem>>) attributes {dimension_semantics = [#tpu.dimension_semantics<parallel>, #tpu.dimension_semantics<arbitrary>], iteration_bounds = array<i64: 1, 1>, scalar_prefetch = 0 : i64, scratch_operands = 1 : i64, tpu.core_type = #tpu.core_type<tc>, window_params = [{transform_indices = @transform_0, window_bounds = array<i64: 16, 128>}, {pipeline_mode = #tpu.pipeline_mode<synchronous>, transform_indices = @transform_1, window_bounds = array<i64: 128, 128>}, {pipeline_mode = #tpu.pipeline_mode<synchronous>, transform_indices = @transform_2, window_bounds = array<i64: 128, 128>}, {pipeline_mode = #tpu.pipeline_mode<synchronous>, transform_indices = @transform_3, window_bounds = array<i64: 1, 128>}, {pipeline_mode = #tpu.pipeline_mode<synchronous>, transform_indices = @transform_4, window_bounds = array<i64: 1, 128>}, {pipeline_mode = #tpu.pipeline_mode<synchronous>, transform_indices = @transform_5, window_bounds = array<i64: 128, 128>}, {pipeline_mode = #tpu.pipeline_mode<synchronous>, transform_indices = @transform_6, window_bounds = array<i64: 1, 128>}, {transform_indices = @transform_7, window_bounds = array<i64: 16, 128>}]} {
    %c0_i32 = arith.constant 0 : i32
    %0 = arith.cmpi eq, %arg1, %c0_i32 : i32
    %1 = arith.extui %0 : i1 to i32
    %c0_i32_0 = arith.constant 0 : i32
    %2 = arith.cmpi ne, %1, %c0_i32_0 : i32
    scf.if %2 {
      %cst_23 = arith.constant 0.000000e+00 : f32
      %31 = vector.broadcast %cst_23 : f32 to vector<16x128xf32>
      %c0_24 = arith.constant 0 : index
      %c0_25 = arith.constant 0 : index
      %32 = vector.load %arg10[%c0_24, %c0_25] : memref<16x128xf32, #tpu.memory_space<vmem>>, vector<16x128xf32>
      tpu.vector_store %arg10[%c0_24, %c0_25], %31 {strides = array<i32>} : memref<16x128xf32, #tpu.memory_space<vmem>>, vector<16x128xf32>,
    } else {
    }
    %c0 = arith.constant 0 : index
    %c0_1 = arith.constant 0 : index
    %3 = vector.load %arg2[%c0, %c0_1] : memref<16x128xf32, #tpu.memory_space<vmem>>, vector<16x128xf32>
    %c0_2 = arith.constant 0 : index
    %c0_3 = arith.constant 0 : index
    %4 = vector.load %arg4[%c0_2, %c0_3] : memref<128x128xf32, #tpu.memory_space<vmem>>, vector<128x128xf32>
    %cst = arith.constant dense<0.000000e+00> : vector<16x128xf32>
    %5 = tpu.matmul %3, %4, %cst {dimension_numbers = #tpu.dot_dimension_numbers<[1], [0], [0], [1], [0, 0, 1, 1], [], []>} : vector<16x128xf32>, vector<128x128xf32>, vector<16x128xf32> -> vector<16x128xf32>
    %c0_4 = arith.constant 0 : index
    %c0_5 = arith.constant 0 : index
    %6 = vector.load %arg6[%c0_4, %c0_5] : memref<1x128xf32, #tpu.memory_space<vmem>>, vector<1x128xf32>
    %7 = vector.broadcast %6 : vector<1x128xf32> to vector<16x128xf32>
    %8 = arith.addf %5, %7 : vector<16x128xf32>
    %cst_6 = arith.constant 5.000000e-01 : f32
    %9 = vector.broadcast %cst_6 : f32 to vector<16x128xf32>
    %10 = arith.mulf %9, %8 : vector<16x128xf32>
    %cst_7 = arith.constant 0.707106769 : f32
    %11 = vector.broadcast %cst_7 : f32 to vector<16x128xf32>
    %12 = arith.mulf %8, %11 : vector<16x128xf32>
    %13 = math.erf %12 : vector<16x128xf32>
    %cst_8 = arith.constant 1.000000e+00 : f32
    %14 = vector.broadcast %cst_8 : f32 to vector<16x128xf32>
    %15 = arith.addf %14, %13 : vector<16x128xf32>
    %16 = arith.mulf %10, %15 : vector<16x128xf32>
    %c0_9 = arith.constant 0 : index
    %c0_10 = arith.constant 0 : index
    %17 = vector.load %arg3[%c0_9, %c0_10] : memref<128x128xf32, #tpu.memory_space<vmem>>, vector<128x128xf32>
    %cst_11 = arith.constant dense<0.000000e+00> : vector<16x128xf32>
    %18 = tpu.matmul %3, %17, %cst_11 {dimension_numbers = #tpu.dot_dimension_numbers<[1], [0], [0], [1], [0, 0, 1, 1], [], []>} : vector<16x128xf32>, vector<128x128xf32>, vector<16x128xf32> -> vector<16x128xf32>
    %c0_12 = arith.constant 0 : index
    %c0_13 = arith.constant 0 : index
    %19 = vector.load %arg5[%c0_12, %c0_13] : memref<1x128xf32, #tpu.memory_space<vmem>>, vector<1x128xf32>
    %20 = vector.broadcast %19 : vector<1x128xf32> to vector<16x128xf32>
    %21 = arith.addf %18, %20 : vector<16x128xf32>
    %22 = arith.mulf %21, %16 : vector<16x128xf32>
    %c0_14 = arith.constant 0 : index
    %c0_15 = arith.constant 0 : index
    %23 = vector.load %arg10[%c0_14, %c0_15] : memref<16x128xf32, #tpu.memory_space<vmem>>, vector<16x128xf32>
    %c0_16 = arith.constant 0 : index
    %c0_17 = arith.constant 0 : index
    %24 = vector.load %arg7[%c0_16, %c0_17] : memref<128x128xf32, #tpu.memory_space<vmem>>, vector<128x128xf32>
    %cst_18 = arith.constant dense<0.000000e+00> : vector<16x128xf32>
    %25 = tpu.matmul %22, %24, %cst_18 {dimension_numbers = #tpu.dot_dimension_numbers<[1], [0], [0], [1], [0, 0, 1, 1], [], []>} : vector<16x128xf32>, vector<128x128xf32>, vector<16x128xf32> -> vector<16x128xf32>
    %26 = arith.addf %23, %25 : vector<16x128xf32>
    %c0_19 = arith.constant 0 : index
    %c0_20 = arith.constant 0 : index
    %27 = vector.load %arg10[%c0_19, %c0_20] : memref<16x128xf32, #tpu.memory_space<vmem>>, vector<16x128xf32>
    tpu.vector_store %arg10[%c0_19, %c0_20], %26 {strides = array<i32>} : memref<16x128xf32, #tpu.memory_space<vmem>>, vector<16x128xf32>,
    %c0_i32_21 = arith.constant 0 : i32
    %28 = arith.cmpi eq, %arg1, %c0_i32_21 : i32
    %29 = arith.extui %28 : i1 to i32
    %c0_i32_22 = arith.constant 0 : i32
    %30 = arith.cmpi ne, %29, %c0_i32_22 : i32
    scf.if %30 {
      %c0_23 = arith.constant 0 : index
      %c0_24 = arith.constant 0 : index
      %31 = vector.load %arg10[%c0_23, %c0_24] : memref<16x128xf32, #tpu.memory_space<vmem>>, vector<16x128xf32>
      %c0_25 = arith.constant 0 : index
      %c0_26 = arith.constant 0 : index
      %32 = vector.load %arg8[%c0_25, %c0_26] : memref<1x128xf32, #tpu.memory_space<vmem>>, vector<1x128xf32>
      %33 = vector.broadcast %32 : vector<1x128xf32> to vector<16x128xf32>
      %34 = arith.addf %31, %33 : vector<16x128xf32>
      %c0_27 = arith.constant 0 : index
      %c0_28 = arith.constant 0 : index
      %35 = vector.load %arg9[%c0_27, %c0_28] : memref<16x128xf32, #tpu.memory_space<vmem>>, vector<16x128xf32>
      tpu.vector_store %arg9[%c0_27, %c0_28], %34 {strides = array<i32>} : memref<16x128xf32, #tpu.memory_space<vmem>>, vector<16x128xf32>,
    } else {
    }
    return
  }
  func.func @transform_0(%arg0: i32, %arg1: i32) -> (i32, i32) {
    %c0_i32 = arith.constant 0 : i32
    %c0_i32_0 = arith.constant 0 : i32
    return %arg0, %c0_i32 : i32, i32
  }
  func.func @transform_1(%arg0: i32, %arg1: i32) -> (i32, i32) {
    %c0_i32 = arith.constant 0 : i32
    %c0_i32_0 = arith.constant 0 : i32
    return %c0_i32, %arg1 : i32, i32
  }
  func.func @transform_2(%arg0: i32, %arg1: i32) -> (i32, i32) {
    %c0_i32 = arith.constant 0 : i32
    %c0_i32_0 = arith.constant 0 : i32
    return %c0_i32, %arg1 : i32, i32
  }
  func.func @transform_3(%arg0: i32, %arg1: i32) -> (i32, i32) {
    %c0_i32 = arith.constant 0 : i32
    %c0_i32_0 = arith.constant 0 : i32
    return %c0_i32, %arg1 : i32, i32
  }
  func.func @transform_4(%arg0: i32, %arg1: i32) -> (i32, i32) {
    %c0_i32 = arith.constant 0 : i32
    %c0_i32_0 = arith.constant 0 : i32
    return %c0_i32, %arg1 : i32, i32
  }
  func.func @transform_5(%arg0: i32, %arg1: i32) -> (i32, i32) {
    %c0_i32 = arith.constant 0 : i32
    %c0_i32_0 = arith.constant 0 : i32
    return %arg1, %c0_i32 : i32, i32
  }
  func.func @transform_6(%arg0: i32, %arg1: i32) -> (i32, i32) {
    %c0_i32 = arith.constant 0 : i32
    %c0_i32_0 = arith.constant 0 : i32
    %c0_i32_1 = arith.constant 0 : i32
    return %c0_i32, %c0_i32_0 : i32, i32
  }
  func.func @transform_7(%arg0: i32, %arg1: i32) -> (i32, i32) {
    %c0_i32 = arith.constant 0 : i32
    %c0_i32_0 = arith.constant 0 : i32
    return %arg0, %c0_i32 : i32, i32
  }
}

module attributes {stable_mosaic.version = 11 : i64} {
  func.func @_ff_kernel(%arg0: i32, %arg1: i32, %arg2: memref<16x128xf32, #tpu.memory_space<vmem>>, %arg3: memref<128x128xf32, #tpu.memory_space<vmem>>, %arg4: memref<128x128xf32, #tpu.memory_space<vmem>>, %arg5: memref<1x128xf32, #tpu.memory_space<vmem>>, %arg6: memref<1x128xf32, #tpu.memory_space<vmem>>, %arg7: memref<128x128xf32, #tpu.memory_space<vmem>>, %arg8: memref<1x128xf32, #tpu.memory_space<vmem>>, %arg9: memref<16x128xf32, #tpu.memory_space<vmem>>, %arg10: memref<16x128xf32, #tpu.memory_space<vmem>>) attributes {dimension_semantics = [#tpu.dimension_semantics<parallel>, #tpu.dimension_semantics<arbitrary>], iteration_bounds = array<i64: 1, 1>, scalar_prefetch = 0 : i64, scratch_operands = 1 : i64, tpu.core_type = #tpu.core_type<tc>, window_params = [{transform_indices = @transform_0, window_bounds = array<i64: 16, 128>}, {transform_indices = @transform_1, window_bounds = array<i64: 128, 128>}, {transform_indices = @transform_2, window_bounds = array<i64: 128, 128>}, {transform_indices = @transform_3, window_bounds = array<i64: 1, 128>}, {transform_indices = @transform_4, window_bounds = array<i64: 1, 128>}, {transform_indices = @transform_5, window_bounds = array<i64: 128, 128>}, {pipeline_mode = #tpu.pipeline_mode<synchronous>, transform_indices = @transform_6, window_bounds = array<i64: 1, 128>}, {transform_indices = @transform_7, window_bounds = array<i64: 16, 128>}]} {
    %c0_i32 = arith.constant 0 : i32
    %0 = arith.cmpi eq, %arg1, %c0_i32 : i32
    %1 = arith.extui %0 : i1 to i32
    %c0_i32_0 = arith.constant 0 : i32
    %2 = arith.cmpi ne, %1, %c0_i32_0 : i32
    scf.if %2 {
      %cst_23 = arith.constant 0.000000e+00 : f32
      %31 = vector.broadcast %cst_23 : f32 to vector<16x128xf32>
      %c0_24 = arith.constant 0 : index
      %c0_25 = arith.constant 0 : index
      %32 = vector.load %arg10[%c0_24, %c0_25] : memref<16x128xf32, #tpu.memory_space<vmem>>, vector<16x128xf32>
      tpu.vector_store %arg10[%c0_24, %c0_25], %31 {strides = array<i32>} : memref<16x128xf32, #tpu.memory_space<vmem>>, vector<16x128xf32>,
    } else {
    }
    %c0 = arith.constant 0 : index
    %c0_1 = arith.constant 0 : index
    %3 = vector.load %arg2[%c0, %c0_1] : memref<16x128xf32, #tpu.memory_space<vmem>>, vector<16x128xf32>
    %c0_2 = arith.constant 0 : index
    %c0_3 = arith.constant 0 : index
    %4 = vector.load %arg4[%c0_2, %c0_3] : memref<128x128xf32, #tpu.memory_space<vmem>>, vector<128x128xf32>
    %cst = arith.constant dense<0.000000e+00> : vector<16x128xf32>
    %5 = tpu.matmul %3, %4, %cst {dimension_numbers = #tpu.dot_dimension_numbers<[1], [0], [0], [1], [0, 0, 1, 1], [], []>} : vector<16x128xf32>, vector<128x128xf32>, vector<16x128xf32> -> vector<16x128xf32>
    %c0_4 = arith.constant 0 : index
    %c0_5 = arith.constant 0 : index
    %6 = vector.load %arg6[%c0_4, %c0_5] : memref<1x128xf32, #tpu.memory_space<vmem>>, vector<1x128xf32>
    %7 = vector.broadcast %6 : vector<1x128xf32> to vector<16x128xf32>
    %8 = arith.addf %5, %7 : vector<16x128xf32>
    %cst_6 = arith.constant 5.000000e-01 : f32
    %9 = vector.broadcast %cst_6 : f32 to vector<16x128xf32>
    %10 = arith.mulf %9, %8 : vector<16x128xf32>
    %cst_7 = arith.constant 0.707106769 : f32
    %11 = vector.broadcast %cst_7 : f32 to vector<16x128xf32>
    %12 = arith.mulf %8, %11 : vector<16x128xf32>
    %13 = math.erf %12 : vector<16x128xf32>
    %cst_8 = arith.constant 1.000000e+00 : f32
    %14 = vector.broadcast %cst_8 : f32 to vector<16x128xf32>
    %15 = arith.addf %14, %13 : vector<16x128xf32>
    %16 = arith.mulf %10, %15 : vector<16x128xf32>
    %c0_9 = arith.constant 0 : index
    %c0_10 = arith.constant 0 : index
    %17 = vector.load %arg3[%c0_9, %c0_10] : memref<128x128xf32, #tpu.memory_space<vmem>>, vector<128x128xf32>
    %cst_11 = arith.constant dense<0.000000e+00> : vector<16x128xf32>
    %18 = tpu.matmul %3, %17, %cst_11 {dimension_numbers = #tpu.dot_dimension_numbers<[1], [0], [0], [1], [0, 0, 1, 1], [], []>} : vector<16x128xf32>, vector<128x128xf32>, vector<16x128xf32> -> vector<16x128xf32>
    %c0_12 = arith.constant 0 : index
    %c0_13 = arith.constant 0 : index
    %19 = vector.load %arg5[%c0_12, %c0_13] : memref<1x128xf32, #tpu.memory_space<vmem>>, vector<1x128xf32>
    %20 = vector.broadcast %19 : vector<1x128xf32> to vector<16x128xf32>
    %21 = arith.addf %18, %20 : vector<16x128xf32>
    %22 = arith.mulf %21, %16 : vector<16x128xf32>
    %c0_14 = arith.constant 0 : index
    %c0_15 = arith.constant 0 : index
    %23 = vector.load %arg10[%c0_14, %c0_15] : memref<16x128xf32, #tpu.memory_space<vmem>>, vector<16x128xf32>
    %c0_16 = arith.constant 0 : index
    %c0_17 = arith.constant 0 : index
    %24 = vector.load %arg7[%c0_16, %c0_17] : memref<128x128xf32, #tpu.memory_space<vmem>>, vector<128x128xf32>
    %cst_18 = arith.constant dense<0.000000e+00> : vector<16x128xf32>
    %25 = tpu.matmul %22, %24, %cst_18 {dimension_numbers = #tpu.dot_dimension_numbers<[1], [0], [0], [1], [0, 0, 1, 1], [], []>} : vector<16x128xf32>, vector<128x128xf32>, vector<16x128xf32> -> vector<16x128xf32>
    %26 = arith.addf %23, %25 : vector<16x128xf32>
    %c0_19 = arith.constant 0 : index
    %c0_20 = arith.constant 0 : index
    %27 = vector.load %arg10[%c0_19, %c0_20] : memref<16x128xf32, #tpu.memory_space<vmem>>, vector<16x128xf32>
    tpu.vector_store %arg10[%c0_19, %c0_20], %26 {strides = array<i32>} : memref<16x128xf32, #tpu.memory_space<vmem>>, vector<16x128xf32>,
    %c0_i32_21 = arith.constant 0 : i32
    %28 = arith.cmpi eq, %arg1, %c0_i32_21 : i32
    %29 = arith.extui %28 : i1 to i32
    %c0_i32_22 = arith.constant 0 : i32
    %30 = arith.cmpi ne, %29, %c0_i32_22 : i32
    scf.if %30 {
      %c0_23 = arith.constant 0 : index
      %c0_24 = arith.constant 0 : index
      %31 = vector.load %arg10[%c0_23, %c0_24] : memref<16x128xf32, #tpu.memory_space<vmem>>, vector<16x128xf32>
      %c0_25 = arith.constant 0 : index
      %c0_26 = arith.constant 0 : index
      %32 = vector.load %arg8[%c0_25, %c0_26] : memref<1x128xf32, #tpu.memory_space<vmem>>, vector<1x128xf32>
      %33 = vector.broadcast %32 : vector<1x128xf32> to vector<16x128xf32>
      %34 = arith.addf %31, %33 : vector<16x128xf32>
      %c0_27 = arith.constant 0 : index
      %c0_28 = arith.constant 0 : index
      %35 = vector.load %arg9[%c0_27, %c0_28] : memref<16x128xf32, #tpu.memory_space<vmem>>, vector<16x128xf32>
      tpu.vector_store %arg9[%c0_27, %c0_28], %34 {strides = array<i32>} : memref<16x128xf32, #tpu.memory_space<vmem>>, vector<16x128xf32>,
    } else {
    }
    return
  }
  func.func @transform_0(%arg0: i32, %arg1: i32) -> (i32, i32) {
    %c0_i32 = arith.constant 0 : i32
    %c0_i32_0 = arith.constant 0 : i32
    return %arg0, %c0_i32 : i32, i32
  }
  func.func @transform_1(%arg0: i32, %arg1: i32) -> (i32, i32) {
    %c0_i32 = arith.constant 0 : i32
    %c0_i32_0 = arith.constant 0 : i32
    return %c0_i32, %arg1 : i32, i32
  }
  func.func @transform_2(%arg0: i32, %arg1: i32) -> (i32, i32) {
    %c0_i32 = arith.constant 0 : i32
    %c0_i32_0 = arith.constant 0 : i32
    return %c0_i32, %arg1 : i32, i32
  }
  func.func @transform_3(%arg0: i32, %arg1: i32) -> (i32, i32) {
    %c0_i32 = arith.constant 0 : i32
    %c0_i32_0 = arith.constant 0 : i32
    return %c0_i32, %arg1 : i32, i32
  }
  func.func @transform_4(%arg0: i32, %arg1: i32) -> (i32, i32) {
    %c0_i32 = arith.constant 0 : i32
    %c0_i32_0 = arith.constant 0 : i32
    return %c0_i32, %arg1 : i32, i32
  }
  func.func @transform_5(%arg0: i32, %arg1: i32) -> (i32, i32) {
    %c0_i32 = arith.constant 0 : i32
    %c0_i32_0 = arith.constant 0 : i32
    return %arg1, %c0_i32 : i32, i32
  }
  func.func @transform_6(%arg0: i32, %arg1: i32) -> (i32, i32) {
    %c0_i32 = arith.constant 0 : i32
    %c0_i32_0 = arith.constant 0 : i32
    %c0_i32_1 = arith.constant 0 : i32
    return %c0_i32, %c0_i32_0 : i32, i32
  }
  func.func @transform_7(%arg0: i32, %arg1: i32) -> (i32, i32) {
    %c0_i32 = arith.constant 0 : i32
    %c0_i32_0 = arith.constant 0 : i32
    return %arg0, %c0_i32 : i32, i32
  }
}

</mosaic_0001>

<bundles_post_ra>
// kernel: tpu_custom_call.1
= control target key start
LH: loop header
LB: loop body
LE: loop exit
PB: predicated region body
PF: predicated region fallthrough
CT: control target
= control target key end

     0   :  { %12 = vsyncpa [#allocation4], 0  ;;  %s962_s0 = inlined_call_operand.hbm [shape: f32[16,128], index: 0, kind: input, shape index: {}]   ;;  %s963_s1 = inlined_call_operand.hbm [shape: f32[128,128], index: 1, kind: input, shape index: {}]   ;;  %s964_s2 = inlined_call_operand.hbm [shape: f32[128,128], index: 2, kind: input, shape index: {}]   ;;  %s965_s3 = inlined_call_operand.vmem [shape: f32[1,128], index: 3, kind: input, shape index: {}]   ;;  %s966_s4 = inlined_call_operand.vmem [shape: f32[1,128], index: 4, kind: input, shape index: {}]   ;;  %s967_s5 = inlined_call_operand.hbm [shape: f32[128,128], index: 5, kind: input, shape index: {}]   ;;  %s968_s6 = inlined_call_operand.vmem [shape: f32[1,128], index: 6, kind: input, shape index: {}]   ;;  %s969_s7 = inlined_call_operand.hbm [shape: f32[16,128], index: 7, kind: output, shape index: {}]  }
   0x1   :  { %13 = vsyncpa [#allocation7], 0 }
   0x2   :  { %14 = vsyncpa [#allocation10], 0 }
   0x3   :  { %15 = vsyncpa [#allocation5], 0  ;;  %s817_s24 = smov [#allocation6]   ;;  %s818_s26 = smov [#allocation3]  }
   0x4   :  { %s33_s25 = sshll.u32 %s817_s24, 4  ;;  %s21_s27 = sshll.u32 %s818_s26, 4  ;;  %s34_s25 = int_to_ptr.vmem [resolvable:$true] %s33_s25  ;;  %s864_s27 = int_to_ptr.vmem [resolvable:$true] %s21_s27 }
   0x5   :  { %s699_s30 = scalar_lea.hbm %s963_s1, 2048 }
   0x6   :  { %p700_p0 = scmp.ne.s32.totalorder %s963_s1, %s699_s30  ;;  %p703_p1 = scmp.lt.u32.totalorder %s699_s30, %s963_s1 }
   0x8   :  { %p705_p2 = pnand %p703_p1, %p700_p0 }
   0xa   :  { %708 = shalt.err (!%p705_p2)
}
   0xb   :  { %s709_s12 = scalar_lea.vmem %s34_s25, 2048  ;;  %p714_p4 = scmp.lt.s32.totalorder %s34_s25, %s34_s25 }
   0xc   :  { %p710_p3 = scmp.ne.s32.totalorder %s34_s25, %s709_s12  ;;  %p715_p5 = scmp.lt.s32.totalorder %s709_s12, %s709_s12 }
   0xe   :  { %p716_p6 = por %p715_p5, %p714_p4 }
  0x10   :  { %p717_p7 = pnand %p716_p6, %p710_p3 }
  0x12   :  { %720 = shalt.err (!%p717_p7)
}
  0x13   :  { %s819_s13 = smov 128   ;;  %s820_s14 = smov 8  }
  0x14   :  { %39 = dma.hbm_to_vmem [thread:$0]  %s963_s1, 2048, %s34_s25, [#allocation7], %s819_s13, %s819_s13, %s820_s14  }
  0x15   :  { %s721_s19 = scalar_lea.hbm %s962_s0, 256 }
  0x16   :  { %p722_p8 = scmp.ne.s32.totalorder %s962_s0, %s721_s19  ;;  %p725_p9 = scmp.lt.u32.totalorder %s721_s19, %s962_s0 }
  0x18   :  { %p727_p10 = pnand %p725_p9, %p722_p8 }
  0x1a   :  { %730 = shalt.err (!%p727_p10)
}
  0x1b   :  { %s731_s24 = scalar_lea.vmem %s864_s27, 256  ;;  %p736_p12 = scmp.lt.s32.totalorder %s864_s27, %s864_s27 }
  0x1c   :  { %p732_p11 = scmp.ne.s32.totalorder %s864_s27, %s731_s24  ;;  %p737_p13 = scmp.lt.s32.totalorder %s731_s24, %s731_s24 }
  0x1e   :  { %p738_p0 = por %p737_p13, %p736_p12 }
  0x20   :  { %p739_p1 = pnand %p738_p0, %p732_p11 }
  0x22   :  { %742 = shalt.err (!%p739_p1)
}
  0x23   :  { %27 = dma.hbm_to_vmem [thread:$0]  %s962_s0, 256, %s864_s27, [#allocation4], %s819_s13, %s819_s13, %s820_s14  }
  0x24   :  { %s821_s26 = smov [#allocation8]   ;;  %s822_s29 = smov [#allocation9]  }
  0x25   :  { %s45_s28 = sshll.u32 %s821_s26, 4  ;;  %s61_s30 = sshll.u32 %s822_s29, 4  ;;  %s46_s28 = int_to_ptr.vmem [resolvable:$true] %s45_s28  ;;  %s901_s30 = int_to_ptr.vmem [resolvable:$true] %s61_s30 }
  0x26   :  { %s743_s10 = scalar_lea.hbm %s964_s2, 2048 }
  0x27   :  { %p744_p2 = scmp.ne.s32.totalorder %s964_s2, %s743_s10  ;;  %p747_p3 = scmp.lt.u32.totalorder %s743_s10, %s964_s2 }
  0x29   :  { %p749_p4 = pnand %p747_p3, %p744_p2 }
  0x2b   :  { %752 = shalt.err (!%p749_p4)
}
  0x2c   :  { %s753_s0 = scalar_lea.vmem %s46_s28, 2048  ;;  %p758_p6 = scmp.lt.s32.totalorder %s46_s28, %s46_s28 }
  0x2d   :  { %p754_p5 = scmp.ne.s32.totalorder %s46_s28, %s753_s0  ;;  %p759_p7 = scmp.lt.s32.totalorder %s753_s0, %s753_s0 }
  0x2f   :  { %p760_p8 = por %p759_p7, %p758_p6 }
  0x31   :  { %p761_p9 = pnand %p760_p8, %p754_p5 }
  0x33   :  { %764 = shalt.err (!%p761_p9)
}
  0x34   :  { %51 = dma.hbm_to_vmem [thread:$0]  %s964_s2, 2048, %s46_s28, [#allocation7], %s819_s13, %s819_s13, %s820_s14  }
  0x35   :  { %s765_s20 = scalar_lea.hbm %s967_s5, 2048 }
  0x36   :  { %p766_p10 = scmp.ne.s32.totalorder %s967_s5, %s765_s20  ;;  %p769_p11 = scmp.lt.u32.totalorder %s765_s20, %s967_s5 }
  0x38   :  { %p771_p12 = pnand %p769_p11, %p766_p10 }
  0x3a   :  { %774 = shalt.err (!%p771_p12)
}
  0x3b   :  { %s775_s1 = scalar_lea.vmem %s901_s30, 2048  ;;  %p780_p0 = scmp.lt.s32.totalorder %s901_s30, %s901_s30 }
  0x3c   :  { %p776_p13 = scmp.ne.s32.totalorder %s901_s30, %s775_s1  ;;  %p781_p1 = scmp.lt.s32.totalorder %s775_s1, %s775_s1 }
  0x3e   :  { %p782_p2 = por %p781_p1, %p780_p0 }
  0x40   :  { %p783_p3 = pnand %p782_p2, %p776_p13 }
  0x42   :  { %786 = shalt.err (!%p783_p3)
}
  0x43   :  { %67 = dma.hbm_to_vmem [thread:$0]  %s967_s5, 2048, %s901_s30, [#allocation10], %s819_s13, %s819_s13, %s820_s14  }
  0x44   :  { %809 = dma.done.wait [#allocation4], 256  }
  0x45   :  { %810 = vsyncadd [#allocation4], 4294967040 }
  0x46   :  { %811 = dma.done.wait [#allocation7], 4096  }
  0x47   :  { %812 = vsyncadd [#allocation7], 4294963200 }
  0x48   :  { %813 = dma.done.wait [#allocation10], 2048  }
  0x49   :  { %814 = vsyncadd [#allocation10], 4294965248  ;;  %v90_v0 = vld [vmem:[#allocation8] sm:$0xff]  ;;  %v91_v1 = vld [vmem:[#allocation8 + $0x8] sm:$0xff]  ;;  %s823_s8 = smov [#allocation11]  }
  0x4a   :  { %v92_v2 = vld [vmem:[#allocation8 + $0x10] sm:$0xff]  ;;  %v592_v3 = vpack.c.bf16 %v91_v1, %v90_v0  ;;  %v93_v4 = vld [vmem:[#allocation8 + $0x18] sm:$0xff]  ;;  %v94_v6 = vld [vmem:[#allocation8 + $0x20] sm:$0xff] }
  0x4b   :  { %v596_v5 = vpack.c.bf16 %v93_v4, %v92_v2  ;;  %v95_v7 = vld [vmem:[#allocation8 + $0x28] sm:$0xff]  ;;  %v198_v8 = vld [vmem:[#allocation6] sm:$0xff]  ;;  %v200_v11 = vld [vmem:[#allocation6 + $0x10] sm:$0xff] }
  0x4c   :  { %593 = vmatprep.subr.bf16.mxu0 %v592_v3  ;;  %v199_v9 = vld [vmem:[#allocation6 + $0x8] sm:$0xff]  ;;  %v600_v12 = vpack.c.bf16 %v95_v7, %v94_v6  ;;  %v96_v13 = vld [vmem:[#allocation8 + $0x30] sm:$0xff]  ;;  %v201_v14 = vld [vmem:[#allocation6 + $0x18] sm:$0xff] }
  0x4d   :  { %595 = vmatpush3.bf16.msra.mxu0 %v592_v3  ;;  %v624_v10 = vpack.c.bf16 %v199_v9, %v198_v8  ;;  %v97_v15 = vld [vmem:[#allocation8 + $0x38] sm:$0xff]  ;;  %v628_v16 = vpack.c.bf16 %v201_v14, %v200_v11  ;;  %v202_v17 = vld [vmem:[#allocation6 + $0x20] sm:$0xff]  ;;  %v203_v18 = vld [vmem:[#allocation6 + $0x28] sm:$0xff] }
  0x4e   :  { %597 = vmatprep.subr.bf16.mxu0 %v596_v5  ;;  %v632_v19 = vpack.c.bf16 %v203_v18, %v202_v17  ;;  %v88_v20 = vld [vmem:[#allocation3] sm:$0xff]  ;;  %v604_v21 = vpack.c.bf16 %v97_v15, %v96_v13  ;;  %v205_v23 = vld [vmem:[#allocation6 + $0x38] sm:$0xff]  ;;  %v98_v24 = vld [vmem:[#allocation8 + $0x40] sm:$0xff] }
  0x4f   :  { %625 = vmatprep.subr.bf16.mxu1 %v624_v10  ;;  %v204_v22 = vld [vmem:[#allocation6 + $0x30] sm:$0xff]  ;;  %519 = vmatprep.mubr.f32.mxu0 %v88_v20  ;;  %v99_v25 = vld [vmem:[#allocation8 + $0x48] sm:$0xff]  ;;  %v206_v28 = vld [vmem:[#allocation6 + $0x40] sm:$0xff] }
  0x50   :  { %627 = vmatpush3.bf16.msra.mxu1 %v624_v10  ;;  %554 = vmatprep.mubr.f32.mxu1 %v88_v20  ;;  %v636_v26 = vpack.c.bf16 %v205_v23, %v204_v22  ;;  %v608_v27 = vpack.c.bf16 %v99_v25, %v98_v24  ;;  %v207_v29 = vld [vmem:[#allocation6 + $0x48] sm:$0xff]  ;;  %v100_v30 = vld [vmem:[#allocation8 + $0x50] sm:$0xff]  ;;  %v101_v31 = vld [vmem:[#allocation8 + $0x58] sm:$0xff] }
  0x51   :  { %599 = vmatpush3.bf16.msra.mxu0 %v596_v5  ;;  %629 = vmatprep.subr.bf16.mxu1 %v628_v16  ;;  %v640_v32 = vpack.c.bf16 %v207_v29, %v206_v28  ;;  %v612_v33 = vpack.c.bf16 %v101_v31, %v100_v30  ;;  %v208_v34 = vld [vmem:[#allocation6 + $0x50] sm:$0xff]  ;;  %v209_v35 = vld [vmem:[#allocation6 + $0x58] sm:$0xff]  ;;  %v102_v36 = vld [vmem:[#allocation8 + $0x60] sm:$0xff] }
  0x52   :  { %601 = vmatprep.subr.bf16.mxu0 %v600_v12  ;;  %v103_v37 = vld [vmem:[#allocation8 + $0x68] sm:$0xff]  ;;  %v644_v38 = vpack.c.bf16 %v209_v35, %v208_v34  ;;  %v210_v40 = vld [vmem:[#allocation6 + $0x60] sm:$0xff]  ;;  %v104_v42 = vld [vmem:[#allocation8 + $0x70] sm:$0xff] }
  0x53   :  { %v616_v39 = vpack.c.bf16 %v103_v37, %v102_v36  ;;  %v211_v41 = vld [vmem:[#allocation6 + $0x68] sm:$0xff]  ;;  %v105_v43 = vld [vmem:[#allocation8 + $0x78] sm:$0xff]  ;;  %v212_v46 = vld [vmem:[#allocation6 + $0x70] sm:$0xff] }
  0x54   :  { %631 = vmatpush3.bf16.msra.mxu1 %v628_v16  ;;  %v648_v44 = vpack.c.bf16 %v211_v41, %v210_v40  ;;  %v620_v45 = vpack.c.bf16 %v105_v43, %v104_v42  ;;  %v213_v47 = vld [vmem:[#allocation6 + $0x78] sm:$0xff]  ;;  %v300_v48 = vld [vmem:[#allocation9] sm:$0xff]  ;;  %v301_v49 = vld [vmem:[#allocation9 + $0x8] sm:$0xff] }
  0x55   :  { %603 = vmatpush3.bf16.msra.mxu0 %v600_v12  ;;  %633 = vmatprep.subr.bf16.mxu1 %v632_v19  ;;  %v652_v50 = vpack.c.bf16 %v213_v47, %v212_v46  ;;  %v656_v51 = vpack.c.bf16 %v301_v49, %v300_v48  ;;  %v302_v52 = vld [vmem:[#allocation9 + $0x10] sm:$0xff]  ;;  %v303_v53 = vld [vmem:[#allocation9 + $0x18] sm:$0xff]  ;;  %v304_v56 = vld [vmem:[#allocation9 + $0x20] sm:$0xff] }
  0x56   :  { %605 = vmatprep.subr.bf16.mxu0 %v604_v21  ;;  %v89_v54 = vld [vmem:[#allocation3 + $0x8] sm:$0xff]  ;;  %v660_v55 = vpack.c.bf16 %v303_v53, %v302_v52  ;;  %v305_v57 = vld [vmem:[#allocation9 + $0x28] sm:$0xff]  ;;  %v306_v59 = vld [vmem:[#allocation9 + $0x30] sm:$0xff] }
  0x57   :  { %v664_v58 = vpack.c.bf16 %v305_v57, %v304_v56  ;;  %v307_v60 = vld [vmem:[#allocation9 + $0x38] sm:$0xff]  ;;  %v308_v62 = vld [vmem:[#allocation9 + $0x40] sm:$0xff]  ;;  %v309_v63 = vld [vmem:[#allocation9 + $0x48] sm:$0xff] }
  0x58   :  { %635 = vmatpush3.bf16.msra.mxu1 %v632_v19  ;;  %v668_v61 = vpack.c.bf16 %v307_v60, %v306_v59  ;;  %v672_v0 = vpack.c.bf16 %v309_v63, %v308_v62  ;;  %v310_v1 = vld [vmem:[#allocation9 + $0x50] sm:$0xff]  ;;  %v311_v2 = vld [vmem:[#allocation9 + $0x58] sm:$0xff]  ;;  %v312_v4 = vld [vmem:[#allocation9 + $0x60] sm:$0xff] }
  0x59   :  { %607 = vmatpush3.bf16.msra.mxu0 %v604_v21  ;;  %637 = vmatprep.subr.bf16.mxu1 %v636_v26  ;;  %v676_v3 = vpack.c.bf16 %v311_v2, %v310_v1  ;;  %v313_v5 = vld [vmem:[#allocation9 + $0x68] sm:$0xff]  ;;  %v314_v7 = vld [vmem:[#allocation9 + $0x70] sm:$0xff]  ;;  %v315_v8 = vld [vmem:[#allocation9 + $0x78] sm:$0xff] }
  0x5a   :  { %609 = vmatprep.subr.bf16.mxu0 %v608_v27  ;;  %v680_v6 = vpack.c.bf16 %v313_v5, %v312_v4  ;;  %v684_v9 = vpack.c.bf16 %v315_v8, %v314_v7  ;;  %v430_v10 = vld [vmem:[%s966_s4] ss:$0 sm:$0xff] }
  0x5b   :  { %v431_v19 = vld [vmem:[%s965_s3] ss:$0 sm:$0xff]  ;;  %s416_s3 = sshll.u32 %s823_s8, 4  ;;  %s417_s3 = int_to_ptr.vmem [resolvable:$true] %s416_s3 }
  0x5c   :  { %639 = vmatpush3.bf16.msra.mxu1 %v636_v26  ;;  %s787_s9 = scalar_lea.vmem %s417_s3, 256  ;;  %p792_p5 = scmp.lt.s32.totalorder %s417_s3, %s417_s3 }
  0x5d   :  { %611 = vmatpush3.bf16.msra.mxu0 %v608_v27  ;;  %641 = vmatprep.subr.bf16.mxu1 %v640_v32  ;;  %p788_p4 = scmp.ne.s32.totalorder %s417_s3, %s787_s9  ;;  %p793_p6 = scmp.lt.s32.totalorder %s787_s9, %s787_s9 }
  0x5e   :  { %613 = vmatprep.subr.bf16.mxu0 %v612_v33 }
  0x5f   :  { %p794_p7 = por %p793_p6, %p792_p5 }
  0x60   :  { %643 = vmatpush3.bf16.msra.mxu1 %v640_v32  ;;  %v432_v32 = vld [vmem:[%s968_s6] ss:$0 sm:$0xff] }
  0x61   :  { %615 = vmatpush3.bf16.msra.mxu0 %v612_v33  ;;  %645 = vmatprep.subr.bf16.mxu1 %v644_v38  ;;  %p795_p8 = pnand %p794_p7, %p788_p4 }
  0x62   :  { %617 = vmatprep.subr.bf16.mxu0 %v616_v39 }
  0x64   :  { %647 = vmatpush3.bf16.msra.mxu1 %v644_v38 }
  0x65   :  { %619 = vmatpush3.bf16.msra.mxu0 %v616_v39  ;;  %649 = vmatprep.subr.bf16.mxu1 %v648_v44 }
  0x66   :  { %621 = vmatprep.subr.bf16.mxu0 %v620_v45 }
  0x68   :  { %651 = vmatpush3.bf16.msra.mxu1 %v648_v44 }
  0x69   :  { %623 = vmatpush3.bf16.msra.mxu0 %v620_v45  ;;  %653 = vmatprep.subr.bf16.mxu1 %v652_v50 }
  0x6a   :  { %657 = vmatprep.subr.bf16.mxu0 %v656_v51 }
  0x6c   :  { %520 = vmatmul.mubr.f32.vlgmr.msra.gmra.mrb[0].mxu0 %v89_v54  ;;  %655 = vmatpush3.bf16.msra.mxu1 %v652_v50 }
  0x6d   :  { %659 = vmatpush3.bf16.msra.mxu0 %v656_v51 }
  0x6e   :  { %661 = vmatprep.subr.bf16.mxu0 %v660_v55 }
  0x6f   :  { %555 = vmatmul.mubr.f32.vlgmr.msra.gmra.mrb[0].mxu1 %v89_v54 }
  0x71   :  { %663 = vmatpush3.bf16.msra.mxu0 %v660_v55 }
  0x72   :  { %665 = vmatprep.subr.bf16.mxu0 %v664_v58 }
  0x75   :  { %667 = vmatpush3.bf16.msra.mxu0 %v664_v58 }
  0x76   :  { %669 = vmatprep.subr.bf16.mxu0 %v668_v61 }
  0x79   :  { %671 = vmatpush3.bf16.msra.mxu0 %v668_v61 }
  0x7a   :  { %673 = vmatprep.subr.bf16.mxu0 %v672_v0 }
  0x7d   :  { %675 = vmatpush3.bf16.msra.mxu0 %v672_v0 }
  0x7e   :  { %677 = vmatprep.subr.bf16.mxu0 %v676_v3 }
  0x81   :  { %679 = vmatpush3.bf16.msra.mxu0 %v676_v3 }
  0x82   :  { %681 = vmatprep.subr.bf16.mxu0 %v680_v6 }
  0x85   :  { %683 = vmatpush3.bf16.msra.mxu0 %v680_v6 }
  0x86   :  { %685 = vmatprep.subr.bf16.mxu0 %v684_v9 }
  0x89   :  { %687 = vmatpush3.bf16.msra.mxu0 %v684_v9 }
 0x13f   :  { %v521_v11 = vpop.f32.mrb[0].mxu0 }
 0x140   :  { %v185_v12 = vadd.f32 %v521_v11, %v430_v10  ;;  %v179_v13 = vpop.f32.mrb[1].mxu0 }
 0x141   :  { %v180_v14 = vadd.f32 %v430_v10, %v179_v13 }
 0x142   :  { %v191_v15 = vmul.f32 0.70710677, %v185_v12  ;;  %v556_v16 = vpop.f32.mrb[0].mxu1  ;;  %v189_v22 = vmul.f32 0.5, %v185_v12 }
 0x143   :  { %v190_v17 = vmul.f32 0.70710677, %v180_v14  ;;  %v287_v18 = vpop.f32.mrb[1].mxu1  ;;  %v293_v24 = vadd.f32 %v556_v16, %v431_v19  ;;  %v188_v25 = vmul.f32 0.5, %v180_v14 }
 0x144   :  { %695 = verf.f32 %v191_v15  ;;  %v288_v27 = vadd.f32 %v431_v19, %v287_v18 }
 0x145   :  { %697 = verf.f32 %v190_v17 }
 0x14e   :  { %v696_v20 = vpop.eup %695 }
 0x14f   :  { %v698_v21 = vpop.eup %697  ;;  %v195_v23 = vadd.f32 1.0, %v696_v20 }
 0x150   :  { %v194_v26 = vadd.f32 1.0, %v698_v21 }
 0x151   :  { %v197_v28 = vmul.f32 %v195_v23, %v189_v22 }
 0x152   :  { %v196_v29 = vmul.f32 %v194_v26, %v188_v25 }
 0x153   :  { %v297_v30 = vmul.f32 %v293_v24, %v197_v28 }
 0x154   :  { %v296_v31 = vmul.f32 %v288_v27, %v196_v29 }
 0x156   :  { %589 = vmatprep.mubr.f32.mxu0 %v296_v31 }
 0x157   :  { %590 = vmatmul.mubr.f32.vlgmr.msra.gmra.mrb[2].mxu0 %v297_v30 }
 0x22a   :  { %v591_v33 = vpop.f32.mrb[2].mxu0 }
 0x22b   :  { %v408_v34 = vadd.f32 %v591_v33, %v432_v32  ;;  %v382_v35 = vpop.f32.mrb[3].mxu0 }
 0x22c   :  { %v407_v36 = vadd.f32 %v432_v32, %v382_v35 }
 0x22d   :  { %410 = vst [vmem:[#allocation11 + $0x8] sm:$0xff] %v408_v34 }
 0x22e   :  { %409 = vst [vmem:[#allocation11] sm:$0xff] %v407_v36 }
 0x22f   :  { %798 = shalt.err (!%p795_p8)
}
 0x230   :  { %s799_s6 = scalar_lea.hbm %s969_s7, 256 }
 0x231   :  { %p800_p9 = scmp.ne.s32.totalorder %s969_s7, %s799_s6  ;;  %p803_p10 = scmp.lt.u32.totalorder %s799_s6, %s969_s7 }
 0x233   :  { %p805_p11 = pnand %p803_p10, %p800_p9 }
 0x235   :  { %808 = shalt.err (!%p805_p11)
}
 0x236   :  { %422 = dma.vmem_to_hbm [thread:$0]  %s417_s3, 256, %s969_s7, [#allocation5], %s819_s13, %s819_s13, %s820_s14  }
 0x237   :  { %815 = dma.done.wait [#allocation5], 256  }
 0x238   :  { %816 = vsyncadd [#allocation5], 4294967040 }
 0x239   :  { %426 = vsyncpa [#allocation4], 1 }
 0x23a   :  { %427 = vsyncpa [#allocation7], 1 }
 0x23b   :  { %428 = vsyncpa [#allocation10], 1 }
 0x23c   :  { %429 = vsyncpa [#allocation5], 1 }

// kernel: tpu_custom_call.1
= control target key start
LH: loop header
LB: loop body
LE: loop exit
PB: predicated region body
PF: predicated region fallthrough
CT: control target
= control target key end

     0   :  { %12 = vsyncpa [#allocation4], 0  ;;  %s962_s0 = inlined_call_operand.hbm [shape: f32[16,128], index: 0, kind: input, shape index: {}]   ;;  %s963_s1 = inlined_call_operand.hbm [shape: f32[128,128], index: 1, kind: input, shape index: {}]   ;;  %s964_s2 = inlined_call_operand.hbm [shape: f32[128,128], index: 2, kind: input, shape index: {}]   ;;  %s965_s3 = inlined_call_operand.vmem [shape: f32[1,128], index: 3, kind: input, shape index: {}]   ;;  %s966_s4 = inlined_call_operand.vmem [shape: f32[1,128], index: 4, kind: input, shape index: {}]   ;;  %s967_s5 = inlined_call_operand.hbm [shape: f32[128,128], index: 5, kind: input, shape index: {}]   ;;  %s968_s6 = inlined_call_operand.vmem [shape: f32[1,128], index: 6, kind: input, shape index: {}]   ;;  %s969_s7 = inlined_call_operand.hbm [shape: f32[16,128], index: 7, kind: output, shape index: {}]  }
   0x1   :  { %13 = vsyncpa [#allocation7], 0 }
   0x2   :  { %14 = vsyncpa [#allocation10], 0 }
   0x3   :  { %15 = vsyncpa [#allocation5], 0  ;;  %s817_s24 = smov [#allocation6]   ;;  %s818_s26 = smov [#allocation3]  }
   0x4   :  { %s33_s25 = sshll.u32 %s817_s24, 4  ;;  %s21_s27 = sshll.u32 %s818_s26, 4  ;;  %s34_s25 = int_to_ptr.vmem [resolvable:$true] %s33_s25  ;;  %s864_s27 = int_to_ptr.vmem [resolvable:$true] %s21_s27 }
   0x5   :  { %s699_s30 = scalar_lea.hbm %s963_s1, 2048 }
   0x6   :  { %p700_p0 = scmp.ne.s32.totalorder %s963_s1, %s699_s30  ;;  %p703_p1 = scmp.lt.u32.totalorder %s699_s30, %s963_s1 }
   0x8   :  { %p705_p2 = pnand %p703_p1, %p700_p0 }
   0xa   :  { %708 = shalt.err (!%p705_p2)
}
   0xb   :  { %s709_s12 = scalar_lea.vmem %s34_s25, 2048  ;;  %p714_p4 = scmp.lt.s32.totalorder %s34_s25, %s34_s25 }
   0xc   :  { %p710_p3 = scmp.ne.s32.totalorder %s34_s25, %s709_s12  ;;  %p715_p5 = scmp.lt.s32.totalorder %s709_s12, %s709_s12 }
   0xe   :  { %p716_p6 = por %p715_p5, %p714_p4 }
  0x10   :  { %p717_p7 = pnand %p716_p6, %p710_p3 }
  0x12   :  { %720 = shalt.err (!%p717_p7)
}
  0x13   :  { %s819_s13 = smov 128   ;;  %s820_s14 = smov 8  }
  0x14   :  { %39 = dma.hbm_to_vmem [thread:$0]  %s963_s1, 2048, %s34_s25, [#allocation7], %s819_s13, %s819_s13, %s820_s14  }
  0x15   :  { %s721_s19 = scalar_lea.hbm %s962_s0, 256 }
  0x16   :  { %p722_p8 = scmp.ne.s32.totalorder %s962_s0, %s721_s19  ;;  %p725_p9 = scmp.lt.u32.totalorder %s721_s19, %s962_s0 }
  0x18   :  { %p727_p10 = pnand %p725_p9, %p722_p8 }
  0x1a   :  { %730 = shalt.err (!%p727_p10)
}
  0x1b   :  { %s731_s24 = scalar_lea.vmem %s864_s27, 256  ;;  %p736_p12 = scmp.lt.s32.totalorder %s864_s27, %s864_s27 }
  0x1c   :  { %p732_p11 = scmp.ne.s32.totalorder %s864_s27, %s731_s24  ;;  %p737_p13 = scmp.lt.s32.totalorder %s731_s24, %s731_s24 }
  0x1e   :  { %p738_p0 = por %p737_p13, %p736_p12 }
  0x20   :  { %p739_p1 = pnand %p738_p0, %p732_p11 }
  0x22   :  { %742 = shalt.err (!%p739_p1)
}
  0x23   :  { %27 = dma.hbm_to_vmem [thread:$0]  %s962_s0, 256, %s864_s27, [#allocation4], %s819_s13, %s819_s13, %s820_s14  }
  0x24   :  { %s821_s26 = smov [#allocation8]   ;;  %s822_s29 = smov [#allocation9]  }
  0x25   :  { %s45_s28 = sshll.u32 %s821_s26, 4  ;;  %s61_s30 = sshll.u32 %s822_s29, 4  ;;  %s46_s28 = int_to_ptr.vmem [resolvable:$true] %s45_s28  ;;  %s901_s30 = int_to_ptr.vmem [resolvable:$true] %s61_s30 }
  0x26   :  { %s743_s10 = scalar_lea.hbm %s964_s2, 2048 }
  0x27   :  { %p744_p2 = scmp.ne.s32.totalorder %s964_s2, %s743_s10  ;;  %p747_p3 = scmp.lt.u32.totalorder %s743_s10, %s964_s2 }
  0x29   :  { %p749_p4 = pnand %p747_p3, %p744_p2 }
  0x2b   :  { %752 = shalt.err (!%p749_p4)
}
  0x2c   :  { %s753_s0 = scalar_lea.vmem %s46_s28, 2048  ;;  %p758_p6 = scmp.lt.s32.totalorder %s46_s28, %s46_s28 }
  0x2d   :  { %p754_p5 = scmp.ne.s32.totalorder %s46_s28, %s753_s0  ;;  %p759_p7 = scmp.lt.s32.totalorder %s753_s0, %s753_s0 }
  0x2f   :  { %p760_p8 = por %p759_p7, %p758_p6 }
  0x31   :  { %p761_p9 = pnand %p760_p8, %p754_p5 }
  0x33   :  { %764 = shalt.err (!%p761_p9)
}
  0x34   :  { %51 = dma.hbm_to_vmem [thread:$0]  %s964_s2, 2048, %s46_s28, [#allocation7], %s819_s13, %s819_s13, %s820_s14  }
  0x35   :  { %s765_s20 = scalar_lea.hbm %s967_s5, 2048 }
  0x36   :  { %p766_p10 = scmp.ne.s32.totalorder %s967_s5, %s765_s20  ;;  %p769_p11 = scmp.lt.u32.totalorder %s765_s20, %s967_s5 }
  0x38   :  { %p771_p12 = pnand %p769_p11, %p766_p10 }
  0x3a   :  { %774 = shalt.err (!%p771_p12)
}
  0x3b   :  { %s775_s1 = scalar_lea.vmem %s901_s30, 2048  ;;  %p780_p0 = scmp.lt.s32.totalorder %s901_s30, %s901_s30 }
  0x3c   :  { %p776_p13 = scmp.ne.s32.totalorder %s901_s30, %s775_s1  ;;  %p781_p1 = scmp.lt.s32.totalorder %s775_s1, %s775_s1 }
  0x3e   :  { %p782_p2 = por %p781_p1, %p780_p0 }
  0x40   :  { %p783_p3 = pnand %p782_p2, %p776_p13 }
  0x42   :  { %786 = shalt.err (!%p783_p3)
}
  0x43   :  { %67 = dma.hbm_to_vmem [thread:$0]  %s967_s5, 2048, %s901_s30, [#allocation10], %s819_s13, %s819_s13, %s820_s14  }
  0x44   :  { %809 = dma.done.wait [#allocation4], 256  }
  0x45   :  { %810 = vsyncadd [#allocation4], 4294967040 }
  0x46   :  { %811 = dma.done.wait [#allocation7], 4096  }
  0x47   :  { %812 = vsyncadd [#allocation7], 4294963200 }
  0x48   :  { %813 = dma.done.wait [#allocation10], 2048  }
  0x49   :  { %814 = vsyncadd [#allocation10], 4294965248  ;;  %v90_v0 = vld [vmem:[#allocation8] sm:$0xff]  ;;  %v91_v1 = vld [vmem:[#allocation8 + $0x8] sm:$0xff]  ;;  %s823_s8 = smov [#allocation11]  }
  0x4a   :  { %v92_v2 = vld [vmem:[#allocation8 + $0x10] sm:$0xff]  ;;  %v592_v3 = vpack.c.bf16 %v91_v1, %v90_v0  ;;  %v93_v4 = vld [vmem:[#allocation8 + $0x18] sm:$0xff]  ;;  %v94_v6 = vld [vmem:[#allocation8 + $0x20] sm:$0xff] }
  0x4b   :  { %v596_v5 = vpack.c.bf16 %v93_v4, %v92_v2  ;;  %v95_v7 = vld [vmem:[#allocation8 + $0x28] sm:$0xff]  ;;  %v198_v8 = vld [vmem:[#allocation6] sm:$0xff]  ;;  %v200_v11 = vld [vmem:[#allocation6 + $0x10] sm:$0xff] }
  0x4c   :  { %593 = vmatprep.subr.bf16.mxu0 %v592_v3  ;;  %v199_v9 = vld [vmem:[#allocation6 + $0x8] sm:$0xff]  ;;  %v600_v12 = vpack.c.bf16 %v95_v7, %v94_v6  ;;  %v96_v13 = vld [vmem:[#allocation8 + $0x30] sm:$0xff]  ;;  %v201_v14 = vld [vmem:[#allocation6 + $0x18] sm:$0xff] }
  0x4d   :  { %595 = vmatpush3.bf16.msra.mxu0 %v592_v3  ;;  %v624_v10 = vpack.c.bf16 %v199_v9, %v198_v8  ;;  %v97_v15 = vld [vmem:[#allocation8 + $0x38] sm:$0xff]  ;;  %v628_v16 = vpack.c.bf16 %v201_v14, %v200_v11  ;;  %v202_v17 = vld [vmem:[#allocation6 + $0x20] sm:$0xff]  ;;  %v203_v18 = vld [vmem:[#allocation6 + $0x28] sm:$0xff] }
  0x4e   :  { %597 = vmatprep.subr.bf16.mxu0 %v596_v5  ;;  %v632_v19 = vpack.c.bf16 %v203_v18, %v202_v17  ;;  %v88_v20 = vld [vmem:[#allocation3] sm:$0xff]  ;;  %v604_v21 = vpack.c.bf16 %v97_v15, %v96_v13  ;;  %v205_v23 = vld [vmem:[#allocation6 + $0x38] sm:$0xff]  ;;  %v98_v24 = vld [vmem:[#allocation8 + $0x40] sm:$0xff] }
  0x4f   :  { %625 = vmatprep.subr.bf16.mxu1 %v624_v10  ;;  %v204_v22 = vld [vmem:[#allocation6 + $0x30] sm:$0xff]  ;;  %519 = vmatprep.mubr.f32.mxu0 %v88_v20  ;;  %v99_v25 = vld [vmem:[#allocation8 + $0x48] sm:$0xff]  ;;  %v206_v28 = vld [vmem:[#allocation6 + $0x40] sm:$0xff] }
  0x50   :  { %627 = vmatpush3.bf16.msra.mxu1 %v624_v10  ;;  %554 = vmatprep.mubr.f32.mxu1 %v88_v20  ;;  %v636_v26 = vpack.c.bf16 %v205_v23, %v204_v22  ;;  %v608_v27 = vpack.c.bf16 %v99_v25, %v98_v24  ;;  %v207_v29 = vld [vmem:[#allocation6 + $0x48] sm:$0xff]  ;;  %v100_v30 = vld [vmem:[#allocation8 + $0x50] sm:$0xff]  ;;  %v101_v31 = vld [vmem:[#allocation8 + $0x58] sm:$0xff] }
  0x51   :  { %599 = vmatpush3.bf16.msra.mxu0 %v596_v5  ;;  %629 = vmatprep.subr.bf16.mxu1 %v628_v16  ;;  %v640_v32 = vpack.c.bf16 %v207_v29, %v206_v28  ;;  %v612_v33 = vpack.c.bf16 %v101_v31, %v100_v30  ;;  %v208_v34 = vld [vmem:[#allocation6 + $0x50] sm:$0xff]  ;;  %v209_v35 = vld [vmem:[#allocation6 + $0x58] sm:$0xff]  ;;  %v102_v36 = vld [vmem:[#allocation8 + $0x60] sm:$0xff] }
  0x52   :  { %601 = vmatprep.subr.bf16.mxu0 %v600_v12  ;;  %v103_v37 = vld [vmem:[#allocation8 + $0x68] sm:$0xff]  ;;  %v644_v38 = vpack.c.bf16 %v209_v35, %v208_v34  ;;  %v210_v40 = vld [vmem:[#allocation6 + $0x60] sm:$0xff]  ;;  %v104_v42 = vld [vmem:[#allocation8 + $0x70] sm:$0xff] }
  0x53   :  { %v616_v39 = vpack.c.bf16 %v103_v37, %v102_v36  ;;  %v211_v41 = vld [vmem:[#allocation6 + $0x68] sm:$0xff]  ;;  %v105_v43 = vld [vmem:[#allocation8 + $0x78] sm:$0xff]  ;;  %v212_v46 = vld [vmem:[#allocation6 + $0x70] sm:$0xff] }
  0x54   :  { %631 = vmatpush3.bf16.msra.mxu1 %v628_v16  ;;  %v648_v44 = vpack.c.bf16 %v211_v41, %v210_v40  ;;  %v620_v45 = vpack.c.bf16 %v105_v43, %v104_v42  ;;  %v213_v47 = vld [vmem:[#allocation6 + $0x78] sm:$0xff]  ;;  %v300_v48 = vld [vmem:[#allocation9] sm:$0xff]  ;;  %v301_v49 = vld [vmem:[#allocation9 + $0x8] sm:$0xff] }
  0x55   :  { %603 = vmatpush3.bf16.msra.mxu0 %v600_v12  ;;  %633 = vmatprep.subr.bf16.mxu1 %v632_v19  ;;  %v652_v50 = vpack.c.bf16 %v213_v47, %v212_v46  ;;  %v656_v51 = vpack.c.bf16 %v301_v49, %v300_v48  ;;  %v302_v52 = vld [vmem:[#allocation9 + $0x10] sm:$0xff]  ;;  %v303_v53 = vld [vmem:[#allocation9 + $0x18] sm:$0xff]  ;;  %v304_v56 = vld [vmem:[#allocation9 + $0x20] sm:$0xff] }
  0x56   :  { %605 = vmatprep.subr.bf16.mxu0 %v604_v21  ;;  %v89_v54 = vld [vmem:[#allocation3 + $0x8] sm:$0xff]  ;;  %v660_v55 = vpack.c.bf16 %v303_v53, %v302_v52  ;;  %v305_v57 = vld [vmem:[#allocation9 + $0x28] sm:$0xff]  ;;  %v306_v59 = vld [vmem:[#allocation9 + $0x30] sm:$0xff] }
  0x57   :  { %v664_v58 = vpack.c.bf16 %v305_v57, %v304_v56  ;;  %v307_v60 = vld [vmem:[#allocation9 + $0x38] sm:$0xff]  ;;  %v308_v62 = vld [vmem:[#allocation9 + $0x40] sm:$0xff]  ;;  %v309_v63 = vld [vmem:[#allocation9 + $0x48] sm:$0xff] }
  0x58   :  { %635 = vmatpush3.bf16.msra.mxu1 %v632_v19  ;;  %v668_v61 = vpack.c.bf16 %v307_v60, %v306_v59  ;;  %v672_v0 = vpack.c.bf16 %v309_v63, %v308_v62  ;;  %v310_v1 = vld [vmem:[#allocation9 + $0x50] sm:$0xff]  ;;  %v311_v2 = vld [vmem:[#allocation9 + $0x58] sm:$0xff]  ;;  %v312_v4 = vld [vmem:[#allocation9 + $0x60] sm:$0xff] }
  0x59   :  { %607 = vmatpush3.bf16.msra.mxu0 %v604_v21  ;;  %637 = vmatprep.subr.bf16.mxu1 %v636_v26  ;;  %v676_v3 = vpack.c.bf16 %v311_v2, %v310_v1  ;;  %v313_v5 = vld [vmem:[#allocation9 + $0x68] sm:$0xff]  ;;  %v314_v7 = vld [vmem:[#allocation9 + $0x70] sm:$0xff]  ;;  %v315_v8 = vld [vmem:[#allocation9 + $0x78] sm:$0xff] }
  0x5a   :  { %609 = vmatprep.subr.bf16.mxu0 %v608_v27  ;;  %v680_v6 = vpack.c.bf16 %v313_v5, %v312_v4  ;;  %v684_v9 = vpack.c.bf16 %v315_v8, %v314_v7  ;;  %v430_v10 = vld [vmem:[%s966_s4] ss:$0 sm:$0xff] }
  0x5b   :  { %v431_v19 = vld [vmem:[%s965_s3] ss:$0 sm:$0xff]  ;;  %s416_s3 = sshll.u32 %s823_s8, 4  ;;  %s417_s3 = int_to_ptr.vmem [resolvable:$true] %s416_s3 }
  0x5c   :  { %639 = vmatpush3.bf16.msra.mxu1 %v636_v26  ;;  %s787_s9 = scalar_lea.vmem %s417_s3, 256  ;;  %p792_p5 = scmp.lt.s32.totalorder %s417_s3, %s417_s3 }
  0x5d   :  { %611 = vmatpush3.bf16.msra.mxu0 %v608_v27  ;;  %641 = vmatprep.subr.bf16.mxu1 %v640_v32  ;;  %p788_p4 = scmp.ne.s32.totalorder %s417_s3, %s787_s9  ;;  %p793_p6 = scmp.lt.s32.totalorder %s787_s9, %s787_s9 }
  0x5e   :  { %613 = vmatprep.subr.bf16.mxu0 %v612_v33 }
  0x5f   :  { %p794_p7 = por %p793_p6, %p792_p5 }
  0x60   :  { %643 = vmatpush3.bf16.msra.mxu1 %v640_v32  ;;  %v432_v32 = vld [vmem:[%s968_s6] ss:$0 sm:$0xff] }
  0x61   :  { %615 = vmatpush3.bf16.msra.mxu0 %v612_v33  ;;  %645 = vmatprep.subr.bf16.mxu1 %v644_v38  ;;  %p795_p8 = pnand %p794_p7, %p788_p4 }
  0x62   :  { %617 = vmatprep.subr.bf16.mxu0 %v616_v39 }
  0x64   :  { %647 = vmatpush3.bf16.msra.mxu1 %v644_v38 }
  0x65   :  { %619 = vmatpush3.bf16.msra.mxu0 %v616_v39  ;;  %649 = vmatprep.subr.bf16.mxu1 %v648_v44 }
  0x66   :  { %621 = vmatprep.subr.bf16.mxu0 %v620_v45 }
  0x68   :  { %651 = vmatpush3.bf16.msra.mxu1 %v648_v44 }
  0x69   :  { %623 = vmatpush3.bf16.msra.mxu0 %v620_v45  ;;  %653 = vmatprep.subr.bf16.mxu1 %v652_v50 }
  0x6a   :  { %657 = vmatprep.subr.bf16.mxu0 %v656_v51 }
  0x6c   :  { %520 = vmatmul.mubr.f32.vlgmr.msra.gmra.mrb[0].mxu0 %v89_v54  ;;  %655 = vmatpush3.bf16.msra.mxu1 %v652_v50 }
  0x6d   :  { %659 = vmatpush3.bf16.msra.mxu0 %v656_v51 }
  0x6e   :  { %661 = vmatprep.subr.bf16.mxu0 %v660_v55 }
  0x6f   :  { %555 = vmatmul.mubr.f32.vlgmr.msra.gmra.mrb[0].mxu1 %v89_v54 }
  0x71   :  { %663 = vmatpush3.bf16.msra.mxu0 %v660_v55 }
  0x72   :  { %665 = vmatprep.subr.bf16.mxu0 %v664_v58 }
  0x75   :  { %667 = vmatpush3.bf16.msra.mxu0 %v664_v58 }
  0x76   :  { %669 = vmatprep.subr.bf16.mxu0 %v668_v61 }
  0x79   :  { %671 = vmatpush3.bf16.msra.mxu0 %v668_v61 }
  0x7a   :  { %673 = vmatprep.subr.bf16.mxu0 %v672_v0 }
  0x7d   :  { %675 = vmatpush3.bf16.msra.mxu0 %v672_v0 }
  0x7e   :  { %677 = vmatprep.subr.bf16.mxu0 %v676_v3 }
  0x81   :  { %679 = vmatpush3.bf16.msra.mxu0 %v676_v3 }
  0x82   :  { %681 = vmatprep.subr.bf16.mxu0 %v680_v6 }
  0x85   :  { %683 = vmatpush3.bf16.msra.mxu0 %v680_v6 }
  0x86   :  { %685 = vmatprep.subr.bf16.mxu0 %v684_v9 }
  0x89   :  { %687 = vmatpush3.bf16.msra.mxu0 %v684_v9 }
 0x13f   :  { %v521_v11 = vpop.f32.mrb[0].mxu0 }
 0x140   :  { %v185_v12 = vadd.f32 %v521_v11, %v430_v10  ;;  %v179_v13 = vpop.f32.mrb[1].mxu0 }
 0x141   :  { %v180_v14 = vadd.f32 %v430_v10, %v179_v13 }
 0x142   :  { %v191_v15 = vmul.f32 0.70710677, %v185_v12  ;;  %v556_v16 = vpop.f32.mrb[0].mxu1  ;;  %v189_v22 = vmul.f32 0.5, %v185_v12 }
 0x143   :  { %v190_v17 = vmul.f32 0.70710677, %v180_v14  ;;  %v287_v18 = vpop.f32.mrb[1].mxu1  ;;  %v293_v24 = vadd.f32 %v556_v16, %v431_v19  ;;  %v188_v25 = vmul.f32 0.5, %v180_v14 }
 0x144   :  { %695 = verf.f32 %v191_v15  ;;  %v288_v27 = vadd.f32 %v431_v19, %v287_v18 }
 0x145   :  { %697 = verf.f32 %v190_v17 }
 0x14e   :  { %v696_v20 = vpop.eup %695 }
 0x14f   :  { %v698_v21 = vpop.eup %697  ;;  %v195_v23 = vadd.f32 1.0, %v696_v20 }
 0x150   :  { %v194_v26 = vadd.f32 1.0, %v698_v21 }
 0x151   :  { %v197_v28 = vmul.f32 %v195_v23, %v189_v22 }
 0x152   :  { %v196_v29 = vmul.f32 %v194_v26, %v188_v25 }
 0x153   :  { %v297_v30 = vmul.f32 %v293_v24, %v197_v28 }
 0x154   :  { %v296_v31 = vmul.f32 %v288_v27, %v196_v29 }
 0x156   :  { %589 = vmatprep.mubr.f32.mxu0 %v296_v31 }
 0x157   :  { %590 = vmatmul.mubr.f32.vlgmr.msra.gmra.mrb[2].mxu0 %v297_v30 }
 0x22a   :  { %v591_v33 = vpop.f32.mrb[2].mxu0 }
 0x22b   :  { %v408_v34 = vadd.f32 %v591_v33, %v432_v32  ;;  %v382_v35 = vpop.f32.mrb[3].mxu0 }
 0x22c   :  { %v407_v36 = vadd.f32 %v432_v32, %v382_v35 }
 0x22d   :  { %410 = vst [vmem:[#allocation11 + $0x8] sm:$0xff] %v408_v34 }
 0x22e   :  { %409 = vst [vmem:[#allocation11] sm:$0xff] %v407_v36 }
 0x22f   :  { %798 = shalt.err (!%p795_p8)
}
 0x230   :  { %s799_s6 = scalar_lea.hbm %s969_s7, 256 }
 0x231   :  { %p800_p9 = scmp.ne.s32.totalorder %s969_s7, %s799_s6  ;;  %p803_p10 = scmp.lt.u32.totalorder %s799_s6, %s969_s7 }
 0x233   :  { %p805_p11 = pnand %p803_p10, %p800_p9 }
 0x235   :  { %808 = shalt.err (!%p805_p11)
}
 0x236   :  { %422 = dma.vmem_to_hbm [thread:$0]  %s417_s3, 256, %s969_s7, [#allocation5], %s819_s13, %s819_s13, %s820_s14  }
 0x237   :  { %815 = dma.done.wait [#allocation5], 256  }
 0x238   :  { %816 = vsyncadd [#allocation5], 4294967040 }
 0x239   :  { %426 = vsyncpa [#allocation4], 1 }
 0x23a   :  { %427 = vsyncpa [#allocation7], 1 }
 0x23b   :  { %428 = vsyncpa [#allocation10], 1 }
 0x23c   :  { %429 = vsyncpa [#allocation5], 1 }

</bundles_post_ra>
